<compile_context>
chip_gen: v7x
topology: tpu7x:2x2x1
jax: 0.10.0
libtpu: 0.0.40
codegen_flags: <defaults>
</compile_context>

<pallas_src>
import jax
import jax.numpy as jnp
from jax.experimental import pallas as pl
from jax.experimental.pallas import tpu as pltpu


_LANES = 128
_MAX_TILE_ROWS = 1024          # rows per block (multiple of 8)
_TILE_BYTE_BUDGET = 2 << 20    # ~2 MiB per tile buffer -> safe on v5e/v7x


def _round_up(a, b):
    return (a + b - 1) // b * b


def _bias_add_kernel(x_ref, b_ref, o_ref):
    # x_ref: (tile_rows, width), b_ref: (1, width) -> lane-broadcast add.
    o_ref[...] = x_ref[...] + b_ref[...]


def bias_forward(x, bias):
    """Pallas implementation of Bias.forward: x + bias (broadcast on last dim)."""
    if x is None:
        # PyTorch returns the raw parameter; no compute to put in a kernel.
        return bias

    size = bias.shape[0]
    orig_shape = x.shape
    assert orig_shape[-1] == size, "last dim of x must equal bias size"
    dtype = x.dtype
    # Intentional: compute in the activation dtype (parameter is cast) rather
    # than torch's f32 promotion for bf16 activations.
    b = bias.astype(dtype)

    total = 1
    for d in orig_shape:
        total *= d

    lane_dense = (size <= _LANES) and (_LANES % size == 0)
    if lane_dense:
        # Repack to a 128-lane-dense layout.  Valid because size | 128: in the
        # row-major flattening, lane l of each 128-wide row maps to bias[l % size].
        width = _LANES
        b_row = jnp.tile(b, _LANES // size).reshape(1, width)
        rows = pl.cdiv(total, width)
        flat = x.reshape(total)
        if rows * width != total:
            flat = jnp.pad(flat, (0, rows * width - total))
        x2 = flat.reshape(rows, width)
    else:
        # Natural (rows, size) view; block last dim equals the full array dim,
        # so the (8,128) divisibility rule is satisfied.
        width = size
        b_row = b.reshape(1, width)
        rows = total // size
        x2 = x.reshape(rows, width)

    # Tile rows: multiple of 8, capped by a per-buffer byte budget so the
    # double-buffered input + output tiles fit scoped VMEM on every generation.
    itemsize = jnp.dtype(dtype).itemsize
    budget_rows = max(8, (_TILE_BYTE_BUDGET // (width * itemsize)) // 8 * 8)
    tile_rows = min(_MAX_TILE_ROWS, budget_rows, _round_up(rows, 8))

    padded_rows = _round_up(rows, tile_rows)
    if padded_rows != rows:
        x2 = jnp.pad(x2, ((0, padded_rows - rows), (0, 0)))

    grid = (padded_rows // tile_rows,)

    out = pl.pallas_call(
        _bias_add_kernel,
        out_shape=jax.ShapeDtypeStruct((padded_rows, width), dtype),
        grid_spec=pl.GridSpec(
            grid=grid,
            in_specs=[
                pl.BlockSpec((tile_rows, width), lambda i: (i, 0)),
                pl.BlockSpec((1, width), lambda i: (0, 0)),
            ],
            out_specs=pl.BlockSpec((tile_rows, width), lambda i: (i, 0)),
        ),
        compiler_params=pltpu.CompilerParams(
            dimension_semantics=("parallel",),
        ),
    )(x2, b_row)

    if lane_dense:
        return out.reshape(padded_rows * width)[:total].reshape(orig_shape)
    return out[:rows].reshape(orig_shape)


if __name__ == "__main__":
    key = jax.random.PRNGKey(0)
    k0, k1, k2 = jax.random.split(key, 3)

    # Small test shape implied by the module: (batch, seq, size).
    batch, seq, size = 2, 8, 32
    # PyTorch initializes bias to zeros; use nonzero values so the add is exercised.
    bias = jnp.arange(size, dtype=jnp.float32) * 0.01
    x = jax.random.normal(k0, (batch, seq, size), dtype=jnp.float32)

    y = jax.block_until_ready(bias_forward(x, bias))
    ref = x + bias
    assert y.shape == x.shape and y.dtype == x.dtype
    assert jnp.allclose(y, ref, atol=1e-6), "mismatch vs reference (small)"

    # Larger shape: exercises the multi-tile pipelined grid + lane-dense repack.
    x_big = jax.random.normal(k1, (8, 2048, size), dtype=jnp.float32)
    y_big = jax.block_until_ready(bias_forward(x_big, bias))
    assert jnp.allclose(y_big, x_big + bias, atol=1e-6), "mismatch vs reference (big)"

    # Non-lane-dense size (128 % 48 != 0): falls back to (rows, size) tiling.
    bias48 = jnp.linspace(-1.0, 1.0, 48, dtype=jnp.float32)
    x48 = jax.random.normal(k2, (2, 16, 48), dtype=jnp.float32)
    y48 = jax.block_until_ready(bias_forward(x48, bias48))
    assert jnp.allclose(y48, x48 + bias48, atol=1e-6), "mismatch vs reference (48)"

    # x is None branch: returns the parameter unchanged.
    b_only = jax.block_until_ready(bias_forward(None, bias))
    assert jnp.allclose(b_only, bias)

    print("KERNEL_OK")
</pallas_src>

<mosaic_0001>
module attributes {stable_mosaic.version = 11 : i64} {
  func.func @_bias_add_kernel(%arg0: i32, %arg1: memref<8x128xf32, #tpu.memory_space<vmem>>, %arg2: memref<1x128xf32, #tpu.memory_space<vmem>>, %arg3: memref<8x128xf32, #tpu.memory_space<vmem>>) attributes {dimension_semantics = [#tpu.dimension_semantics<parallel>], iteration_bounds = array<i64: 1>, scalar_prefetch = 0 : i64, scratch_operands = 0 : i64, tpu.core_type = #tpu.core_type<tc>, window_params = [{transform_indices = @transform_0, window_bounds = array<i64: 8, 128>}, {pipeline_mode = #tpu.pipeline_mode<synchronous>, transform_indices = @transform_1, window_bounds = array<i64: 1, 128>}, {transform_indices = @transform_2, window_bounds = array<i64: 8, 128>}]} {
    %c0 = arith.constant 0 : index
    %c0_0 = arith.constant 0 : index
    %0 = vector.load %arg1[%c0, %c0_0] : memref<8x128xf32, #tpu.memory_space<vmem>>, vector<8x128xf32>
    %c0_1 = arith.constant 0 : index
    %c0_2 = arith.constant 0 : index
    %1 = vector.load %arg2[%c0_1, %c0_2] : memref<1x128xf32, #tpu.memory_space<vmem>>, vector<1x128xf32>
    %2 = vector.broadcast %1 : vector<1x128xf32> to vector<8x128xf32>
    %3 = arith.addf %0, %2 : vector<8x128xf32>
    %c0_3 = arith.constant 0 : index
    %c0_4 = arith.constant 0 : index
    %4 = vector.load %arg3[%c0_3, %c0_4] : memref<8x128xf32, #tpu.memory_space<vmem>>, vector<8x128xf32>
    tpu.vector_store %arg3[%c0_3, %c0_4], %3 {strides = array<i32>} : memref<8x128xf32, #tpu.memory_space<vmem>>, vector<8x128xf32>,
    return
  }
  func.func @transform_0(%arg0: i32) -> (i32, i32) {
    %c0_i32 = arith.constant 0 : i32
    %c0_i32_0 = arith.constant 0 : i32
    return %arg0, %c0_i32 : i32, i32
  }
  func.func @transform_1(%arg0: i32) -> (i32, i32) {
    %c0_i32 = arith.constant 0 : i32
    %c0_i32_0 = arith.constant 0 : i32
    %c0_i32_1 = arith.constant 0 : i32
    return %c0_i32, %c0_i32_0 : i32, i32
  }
  func.func @transform_2(%arg0: i32) -> (i32, i32) {
    %c0_i32 = arith.constant 0 : i32
    %c0_i32_0 = arith.constant 0 : i32
    return %arg0, %c0_i32 : i32, i32
  }
}

</mosaic_0001>

<bundles_post_ra>
// kernel: tpu_custom_call.1
= control target key start
LH: loop header
LB: loop body
LE: loop exit
PB: predicated region body
PF: predicated region fallthrough
CT: control target
= control target key end

     0   :  { %7 = vsyncpa [#allocation3], 0  ;;  %s144_s0 = inlined_call_operand.hbm [shape: f32[8,128], index: 0, kind: input, shape index: {}]   ;;  %s145_s1 = inlined_call_operand.vmem [shape: f32[1,128], index: 1, kind: input, shape index: {}]   ;;  %s146_s2 = inlined_call_operand.hbm [shape: f32[8,128], index: 2, kind: output, shape index: {}]  }
   0x1   :  { %8 = vsyncpa [#allocation4], 0  ;;  %s100_s9 = smov [#allocation2]   ;;  %s52_s13 = scalar_lea.hbm %s144_s0, 128 }
   0x2   :  { %s15_s10 = sshll.u32 %s100_s9, 4  ;;  %p53_p0 = scmp.ne.s32.totalorder %s144_s0, %s52_s13  ;;  %s16_s10 = int_to_ptr.vmem [resolvable:$true] %s15_s10 }
   0x3   :  { %p56_p1 = scmp.lt.u32.totalorder %s52_s13, %s144_s0 }
   0x5   :  { %p58_p2 = pnand %p56_p1, %p53_p0 }
   0x7   :  { %61 = shalt.err (!%p58_p2)
}
   0x8   :  { %s62_s18 = scalar_lea.vmem %s16_s10, 128  ;;  %p67_p4 = scmp.lt.s32.totalorder %s16_s10, %s16_s10 }
   0x9   :  { %p63_p3 = scmp.ne.s32.totalorder %s16_s10, %s62_s18  ;;  %p68_p5 = scmp.lt.s32.totalorder %s62_s18, %s62_s18 }
   0xb   :  { %p69_p6 = por %p68_p5, %p67_p4 }
   0xd   :  { %p70_p7 = pnand %p69_p6, %p63_p3 }
   0xf   :  { %73 = shalt.err (!%p70_p7)
}
  0x10   :  { %18 = dma.hbm_to_vmem [thread:$0]  %s144_s0, 128, %s16_s10, [#allocation3]  }
  0x11   :  { %96 = dma.done.wait [#allocation3], 128  }
  0x12   :  { %97 = vsyncadd [#allocation3], 4294967168  ;;  %s101_s21 = smov [#allocation5]   ;;  %v24_v0 = vld [vmem:[#allocation2] sm:$0xff] }
  0x13   :  { %s40_s22 = sshll.u32 %s101_s21, 4  ;;  %v49_v1 = vld [vmem:[%s145_s1] ss:$0 sm:$0xff]  ;;  %s41_s22 = int_to_ptr.vmem [resolvable:$true] %s40_s22 }
  0x14   :  { %v32_v2 = vadd.f32 %v49_v1, %v24_v0  ;;  %s74_s25 = scalar_lea.vmem %s41_s22, 128  ;;  %p79_p9 = scmp.lt.s32.totalorder %s41_s22, %s41_s22 }
  0x15   :  { %p75_p8 = scmp.ne.s32.totalorder %s41_s22, %s74_s25  ;;  %p80_p10 = scmp.lt.s32.totalorder %s74_s25, %s74_s25 }
  0x16   :  { %33 = vst [vmem:[#allocation5] sm:$0xff] %v32_v2 }
  0x17   :  { %p81_p11 = por %p80_p10, %p79_p9 }
  0x19   :  { %p82_p12 = pnand %p81_p11, %p75_p8 }
  0x1b   :  { %85 = shalt.err (!%p82_p12)
}
  0x1c   :  { %s86_s27 = scalar_lea.hbm %s146_s2, 128 }
  0x1d   :  { %p87_p13 = scmp.ne.s32.totalorder %s146_s2, %s86_s27  ;;  %p90_p0 = scmp.lt.u32.totalorder %s86_s27, %s146_s2 }
  0x1f   :  { %p92_p1 = pnand %p90_p0, %p87_p13 }
  0x21   :  { %95 = shalt.err (!%p92_p1)
}
  0x22   :  { %43 = dma.vmem_to_hbm [thread:$0]  %s41_s22, 128, %s146_s2, [#allocation4]  }
  0x23   :  { %98 = dma.done.wait [#allocation4], 128  }
  0x24   :  { %99 = vsyncadd [#allocation4], 4294967168 }
  0x25   :  { %47 = vsyncpa [#allocation3], 1 }
  0x26   :  { %48 = vsyncpa [#allocation4], 1 }

</bundles_post_ra>
